<compile_context>
chip_gen: v7x
topology: tpu7x:2x2x1
jax: 0.10.0
libtpu: 0.0.40
codegen_flags: <defaults>
</compile_context>

<pallas_src>
import jax
import jax.numpy as jnp
from jax.experimental import pallas as pl
from jax.experimental.pallas import tpu as pltpu


def _mlp_head_kernel(x_ref, w1_ref, b1_ref, w2_ref, b2_ref, out_ref):
    # Fused 2-layer MLP on one tile of nodes: relu(x @ W1 + b1) @ W2 + b2.
    # MXU accumulates in f32; bias-add / ReLU stay in f32 (v5e has no bf16 VPU
    # path, and this matches the PyTorch reference math most closely).
    x = x_ref[...]
    h = jnp.dot(x, w1_ref[...], preferred_element_type=jnp.float32)
    h = jnp.maximum(h + b1_ref[...].astype(jnp.float32), 0.0)
    y = jnp.dot(h.astype(w2_ref.dtype), w2_ref[...],
                preferred_element_type=jnp.float32)
    y = y + b2_ref[...].astype(jnp.float32)
    out_ref[...] = y.astype(out_ref.dtype)


def _choose_tile(n_rows, tile_n):
    """Largest useful row tile: <= tile_n, multiple of 8, and keep >=2 grid
    steps when possible (v7x has 2 TensorCores per chip)."""
    half_rounded = ((-(-n_rows // 2)) + 7) // 8 * 8
    return max(8, min(tile_n, half_rounded))


def node_head_forward(x, y, params, *, tile_n=512):
    """Pallas equivalent of ExampleNodeHead.forward.

    x: [N, dim_in] node features, y: [N] (or [N, ...]) node labels.
    Returns (pred [N, dim_out], label) exactly like the PyTorch head.
    """
    w1, b1, w2, b2 = params
    N, dim_in = x.shape
    dim_hidden = w1.shape[1]
    dim_out = w2.shape[1]

    tn = _choose_tile(N, tile_n)
    grid_n = pl.cdiv(N, tn)
    n_pad = grid_n * tn

    # Pad the tail tile with zero rows (discarded after the call) so tile_n is
    # a free perf knob regardless of the real node count.
    x_p = x if n_pad == N else jnp.pad(x, ((0, n_pad - N), (0, 0)))

    flops = 2 * n_pad * (dim_in * dim_hidden + dim_hidden * dim_out)
    bytes_accessed = (
        x_p.size * x_p.dtype.itemsize
        + n_pad * dim_out * x.dtype.itemsize
        + sum(int(p.size) * p.dtype.itemsize for p in params)
    )

    pred = pl.pallas_call(
        _mlp_head_kernel,
        out_shape=jax.ShapeDtypeStruct((n_pad, dim_out), x.dtype),
        grid_spec=pl.GridSpec(
            grid=(grid_n,),
            in_specs=[
                pl.BlockSpec((tn, dim_in), lambda i: (i, 0)),           # x tile
                pl.BlockSpec((dim_in, dim_hidden), lambda i: (0, 0)),   # W1 (resident)
                pl.BlockSpec((1, dim_hidden), lambda i: (0, 0)),        # b1
                pl.BlockSpec((dim_hidden, dim_out), lambda i: (0, 0)),  # W2 (resident)
                pl.BlockSpec((1, dim_out), lambda i: (0, 0)),           # b2
            ],
            out_specs=pl.BlockSpec((tn, dim_out), lambda i: (i, 0)),
        ),
        compiler_params=pltpu.CompilerParams(
            dimension_semantics=("parallel",),
        ),
        cost_estimate=pl.CostEstimate(
            flops=flops, transcendentals=0, bytes_accessed=bytes_accessed),
    )(x_p, w1, b1, w2, b2)

    if n_pad != N:
        pred = pred[:N]

    # Head returns (pred, label); label passes through untouched.
    return pred, y


def init_params(key, dim_in, dim_hidden, dim_out, dtype=jnp.float32):
    """Deterministic synthetic parameter init (same shapes as the PyTorch MLP)."""
    k1, k2 = jax.random.split(key)
    scale1 = 1.0 / jnp.sqrt(jnp.float32(dim_in))
    scale2 = 1.0 / jnp.sqrt(jnp.float32(dim_hidden))
    w1 = (jax.random.normal(k1, (dim_in, dim_hidden), jnp.float32) * scale1).astype(dtype)
    b1 = jnp.zeros((1, dim_hidden), dtype)
    w2 = (jax.random.normal(k2, (dim_hidden, dim_out), jnp.float32) * scale2).astype(dtype)
    b2 = jnp.zeros((1, dim_out), dtype)
    return w1, b1, w2, b2


def reference_forward(x, y, params):
    w1, b1, w2, b2 = (p.astype(jnp.float32) for p in params)
    h = jnp.maximum(x.astype(jnp.float32) @ w1 + b1, 0.0)
    return h @ w2 + b2, y


if __name__ == "__main__":
    # Small shapes: 200 nodes (not a multiple of the tile -> exercises the
    # padded tail path), dim_in=32 features, dim_out=8 classes.
    N, DIM_IN, DIM_OUT = 200, 32, 8
    key = jax.random.PRNGKey(0)
    kx, ky, kp = jax.random.split(key, 3)

    x = jax.random.normal(kx, (N, DIM_IN), jnp.float32)
    y = jax.random.randint(ky, (N,), 0, DIM_OUT, jnp.int32)  # node labels
    params = init_params(kp, DIM_IN, DIM_IN, DIM_OUT)

    # --- f32 path (matches the PyTorch module bit-for-bit up to f32 rounding)
    pred, label = node_head_forward(x, y, params)
    pred = jax.block_until_ready(pred)
    label = jax.block_until_ready(label)

    ref_pred, _ = reference_forward(x, y, params)
    assert pred.shape == (N, DIM_OUT)
    assert label.shape == (N,)
    assert jnp.allclose(pred, ref_pred, atol=1e-4, rtol=1e-4)

    # --- bf16 input/param path (halves the dominant HBM read of x; f32 accum)
    x_bf16 = x.astype(jnp.bfloat16)
    params_bf16 = tuple(p.astype(jnp.bfloat16) for p in params)
    pred_bf16, _ = node_head_forward(x_bf16, y, params_bf16)
    pred_bf16 = jax.block_until_ready(pred_bf16)

    ref_bf16, _ = reference_forward(x_bf16, y, params_bf16)  # f32 math on bf16 inputs
    assert pred_bf16.shape == (N, DIM_OUT)
    assert jnp.allclose(pred_bf16.astype(jnp.float32), ref_bf16,
                        atol=5e-2, rtol=5e-2)

    print("KERNEL_OK")
</pallas_src>

<mosaic_0001>
module attributes {stable_mosaic.version = 11 : i64} {
  func.func @_mlp_head_kernel(%arg0: i32, %arg1: memref<104x32xf32, #tpu.memory_space<vmem>>, %arg2: memref<32x32xf32, #tpu.memory_space<vmem>>, %arg3: memref<1x32xf32, #tpu.memory_space<vmem>>, %arg4: memref<32x8xf32, #tpu.memory_space<vmem>>, %arg5: memref<1x8xf32, #tpu.memory_space<vmem>>, %arg6: memref<104x8xf32, #tpu.memory_space<vmem>>) attributes {dimension_semantics = [#tpu.dimension_semantics<parallel>], iteration_bounds = array<i64: 2>, scalar_prefetch = 0 : i64, scratch_operands = 0 : i64, tpu.core_type = #tpu.core_type<tc>, window_params = [{transform_indices = @transform_0, window_bounds = array<i64: 104, 32>}, {pipeline_mode = #tpu.pipeline_mode<synchronous>, transform_indices = @transform_1, window_bounds = array<i64: 32, 32>}, {pipeline_mode = #tpu.pipeline_mode<synchronous>, transform_indices = @transform_2, window_bounds = array<i64: 1, 32>}, {pipeline_mode = #tpu.pipeline_mode<synchronous>, transform_indices = @transform_3, window_bounds = array<i64: 32, 8>}, {pipeline_mode = #tpu.pipeline_mode<synchronous>, transform_indices = @transform_4, window_bounds = array<i64: 1, 8>}, {transform_indices = @transform_5, window_bounds = array<i64: 104, 8>}]} {
    %c0 = arith.constant 0 : index
    %c0_0 = arith.constant 0 : index
    %0 = vector.load %arg1[%c0, %c0_0] : memref<104x32xf32, #tpu.memory_space<vmem>>, vector<104x32xf32>
    %c0_1 = arith.constant 0 : index
    %c0_2 = arith.constant 0 : index
    %1 = vector.load %arg2[%c0_1, %c0_2] : memref<32x32xf32, #tpu.memory_space<vmem>>, vector<32x32xf32>
    %cst = arith.constant dense<0.000000e+00> : vector<104x32xf32>
    %2 = tpu.matmul %0, %1, %cst {dimension_numbers = #tpu.dot_dimension_numbers<[1], [0], [0], [1], [0, 0, 1, 1], [], []>} : vector<104x32xf32>, vector<32x32xf32>, vector<104x32xf32> -> vector<104x32xf32>
    %c0_3 = arith.constant 0 : index
    %c0_4 = arith.constant 0 : index
    %3 = vector.load %arg3[%c0_3, %c0_4] : memref<1x32xf32, #tpu.memory_space<vmem>>, vector<1x32xf32>
    %4 = vector.broadcast %3 : vector<1x32xf32> to vector<104x32xf32>
    %5 = arith.addf %2, %4 : vector<104x32xf32>
    %cst_5 = arith.constant 0.000000e+00 : f32
    %6 = vector.broadcast %cst_5 : f32 to vector<104x32xf32>
    %7 = arith.maximumf %5, %6 : vector<104x32xf32>
    %c0_6 = arith.constant 0 : index
    %c0_7 = arith.constant 0 : index
    %8 = vector.load %arg4[%c0_6, %c0_7] : memref<32x8xf32, #tpu.memory_space<vmem>>, vector<32x8xf32>
    %cst_8 = arith.constant dense<0.000000e+00> : vector<104x8xf32>
    %9 = tpu.matmul %7, %8, %cst_8 {dimension_numbers = #tpu.dot_dimension_numbers<[1], [0], [0], [1], [0, 0, 1, 1], [], []>} : vector<104x32xf32>, vector<32x8xf32>, vector<104x8xf32> -> vector<104x8xf32>
    %c0_9 = arith.constant 0 : index
    %c0_10 = arith.constant 0 : index
    %10 = vector.load %arg5[%c0_9, %c0_10] : memref<1x8xf32, #tpu.memory_space<vmem>>, vector<1x8xf32>
    %11 = vector.broadcast %10 : vector<1x8xf32> to vector<104x8xf32>
    %12 = arith.addf %9, %11 : vector<104x8xf32>
    %c0_11 = arith.constant 0 : index
    %c0_12 = arith.constant 0 : index
    %13 = vector.load %arg6[%c0_11, %c0_12] : memref<104x8xf32, #tpu.memory_space<vmem>>, vector<104x8xf32>
    tpu.vector_store %arg6[%c0_11, %c0_12], %12 {strides = array<i32>} : memref<104x8xf32, #tpu.memory_space<vmem>>, vector<104x8xf32>,
    return
  }
  func.func @transform_0(%arg0: i32) -> (i32, i32) {
    %c0_i32 = arith.constant 0 : i32
    %c0_i32_0 = arith.constant 0 : i32
    return %arg0, %c0_i32 : i32, i32
  }
  func.func @transform_1(%arg0: i32) -> (i32, i32) {
    %c0_i32 = arith.constant 0 : i32
    %c0_i32_0 = arith.constant 0 : i32
    %c0_i32_1 = arith.constant 0 : i32
    return %c0_i32, %c0_i32_0 : i32, i32
  }
  func.func @transform_2(%arg0: i32) -> (i32, i32) {
    %c0_i32 = arith.constant 0 : i32
    %c0_i32_0 = arith.constant 0 : i32
    %c0_i32_1 = arith.constant 0 : i32
    return %c0_i32, %c0_i32_0 : i32, i32
  }
  func.func @transform_3(%arg0: i32) -> (i32, i32) {
    %c0_i32 = arith.constant 0 : i32
    %c0_i32_0 = arith.constant 0 : i32
    %c0_i32_1 = arith.constant 0 : i32
    return %c0_i32, %c0_i32_0 : i32, i32
  }
  func.func @transform_4(%arg0: i32) -> (i32, i32) {
    %c0_i32 = arith.constant 0 : i32
    %c0_i32_0 = arith.constant 0 : i32
    %c0_i32_1 = arith.constant 0 : i32
    return %c0_i32, %c0_i32_0 : i32, i32
  }
  func.func @transform_5(%arg0: i32) -> (i32, i32) {
    %c0_i32 = arith.constant 0 : i32
    %c0_i32_0 = arith.constant 0 : i32
    return %arg0, %c0_i32 : i32, i32
  }
}

</mosaic_0001>

<bundles_post_ra>
// kernel: tpu_custom_call.1
= control target key start
LH: loop header
LB: loop body
LE: loop exit
PB: predicated region body
PF: predicated region fallthrough
CT: control target
= control target key end

     0   :  { %s914_s18 = smov 0   ;;  %s1104_s0 = inlined_call_operand.vmem [shape: f32[208,32], index: 0, kind: input, shape index: {}]   ;;  %s1105_s1 = inlined_call_operand.vmem [shape: f32[32,32], index: 1, kind: input, shape index: {}]   ;;  %s1106_s2 = inlined_call_operand.vmem [shape: f32[1,32], index: 2, kind: input, shape index: {}]   ;;  %s1107_s3 = inlined_call_operand.vmem [shape: f32[32,8], index: 3, kind: input, shape index: {}]   ;;  %s1108_s4 = inlined_call_operand.vmem [shape: f32[1,8], index: 4, kind: input, shape index: {}]   ;;  %s1109_s5 = inlined_call_operand.vmem [shape: f32[208,8], index: 5, kind: output, shape index: {}]  }
   0x1 LB: > { %s685_s19 = sadd.s32 4294967295, %s879_s18   ;;  %p689_p0 = scmp.ge.s32.totalorder %s879_s18, 1  ;;  %s879_s18 = sphi %s914_s18, %s15_s18  }
   0x2   : > { %p188_p1 = scmp.lt.s32.totalorder %s879_s18, 3 }
   0x4   : > { %p189_p2 = pnand %p689_p0, %p188_p1 }
   0x5   : > { %v241_v0 = vld [vmem:[%s1105_s1] sm:$0xff] (!%p189_p2)  ;;  %v242_v1 = vld [vmem:[%s1105_s1 + $0x8] sm:$0xff] (!%p189_p2)  ;;  %v243_v2 = vld [vmem:[%s1105_s1 + $0x10] sm:$0xff] (!%p189_p2)  ;;  %v881_v3 = vmov (!%p189_p2), 0.0|0.0   ;;  %vm882_vm0 = vmmov (!%p189_p2), 0   ;;  %v883_v6 = vmov (!%p189_p2), 0.0  }
   0x6   : > { %192 = sbr.rel (%p189_p2) target bundleno = 496 (0x1f0), region = 40  ;;  %850 = vmatprep.subr.bf16.mxu0 (!%p189_p2), %v881_v3  ;;  %v851_v4 = vpack.c.bf16 (!%p189_p2), %v242_v1, %v241_v0  ;;  %v244_v5 = vld [vmem:[%s1105_s1 + $0x18] sm:$0xff] (!%p189_p2)  ;;  %764 = vmatprep.mubr.msk.f32.mxu0 (!%p189_p2), %vm882_vm0, %v883_v6  ;;  %v435_v7 = vld [vmem:[%s1107_s3] sm:$0xff] (!%p189_p2)  ;;  %v436_v8 = vld [vmem:[%s1107_s3 + $0x8] sm:$0xff] (!%p189_p2)  ;;  %vm252_vm1 = vcmask (!%p189_p2), 261120   ;;  %vm615_vm2 = vcmask (!%p189_p2), 64512  }
   0x7   : > { %s216_s28 = smul.u32 (!%p189_p2), 13, %s685_s19  ;;  %856 = vmatprep.subr.bf16.mxu1 (!%p189_p2), %v881_v3  ;;  %v857_v9 = vpack.c.bf16 (!%p189_p2), %v436_v8, %v435_v7  ;;  %811 = vmatprep.mubr.msk.f32.mxu1 (!%p189_p2), %vm882_vm0, %v883_v6  ;;  %v854_v10 = vpack.c.bf16 (!%p189_p2), %v244_v5, %v243_v2  ;;  %v437_v24 = vld [vmem:[%s1107_s3 + $0x10] sm:$0xff] (!%p189_p2)  ;;  %v438_v25 = vld [vmem:[%s1107_s3 + $0x18] sm:$0xff] (!%p189_p2)  ;;  %v1013_v27 = vld [vmem:[%s1106_s2] ss:$0 sm:$0xff] (!%p189_p2) }
   0x8   : > { %852 = vmatpush3.bf16.msra.mxu0 (!%p189_p2), %v851_v4  ;;  %v860_v26 = vpack.c.bf16 (!%p189_p2), %v438_v25, %v437_v24 }
   0x9   : > { %p217_p3 = scmp.lt.s32.totalorder (!%p189_p2), %s216_s28, 25  ;;  %853 = vmatprep.subr.bf16.mxu0 (!%p189_p2), %v881_v3  ;;  %858 = vmatpush3.bf16.msra.mxu1 (!%p189_p2), %v857_v9 }
   0xa   : > { %859 = vmatprep.subr.bf16.mxu1 (!%p189_p2), %v881_v3 }
   0xc   : > { %855 = vmatpush3.bf16.msra.mxu0 (!%p189_p2), %v854_v10 }
   0xd   : > { %s1111_s28 = smov (!%p217_p3, %s216_s28), 25  ;;  %861 = vmatpush3.bf16.msra.mxu1 %v860_v26 }
   0xe   : > { %s690_s8 = sshll.u32 %s1111_s28, 3 }
   0xf   : > { %s952_s11 = scalar_lea.vmem %s1104_s0, %s690_s8  ;;  %s1073_s23 = scalar_lea.vmem %s1109_s5, %s690_s8 }
  0x10   : > { %v228_v11 = vld [vmem:[%s952_s11] sm:$0xff]  ;;  %v229_v12 = vld [vmem:[%s952_s11 + $0x8] sm:$0xff]  ;;  %v230_v13 = vld [vmem:[%s952_s11 + $0x10] sm:$0xff] }
  0x11   : > { %765 = vmatmul.mubr.msk.f32.vlgmr.msra.gmra.mrb[0].mxu0 %vm252_vm1, %v228_v11  ;;  %v231_v14 = vld [vmem:[%s952_s11 + $0x18] sm:$0xff]  ;;  %v232_v15 = vld [vmem:[%s952_s11 + $0x20] sm:$0xff]  ;;  %v233_v16 = vld [vmem:[%s952_s11 + $0x28] sm:$0xff] }
  0x12   : > { %767 = vmatprep.mubr.msk.f32.mxu0 %vm882_vm0, %v883_v6  ;;  %v234_v17 = vld [vmem:[%s952_s11 + $0x30] sm:$0xff]  ;;  %v235_v18 = vld [vmem:[%s952_s11 + $0x38] sm:$0xff]  ;;  %v236_v19 = vld [vmem:[%s952_s11 + $0x40] sm:$0xff] }
  0x13   : > { %v237_v20 = vld [vmem:[%s952_s11 + $0x48] sm:$0xff]  ;;  %v238_v21 = vld [vmem:[%s952_s11 + $0x50] sm:$0xff]  ;;  %v239_v22 = vld [vmem:[%s952_s11 + $0x58] sm:$0xff] }
  0x14   : > { %v240_v23 = vld [vmem:[%s952_s11 + $0x60] sm:$0xff] }
  0x15   : > { %768 = vmatmul.mubr.msk.f32.gmra.mrb[2].mxu0 %vm252_vm1, %v229_v12 }
  0x16   : > { %770 = vmatprep.mubr.msk.f32.mxu0 %vm882_vm0, %v883_v6 }
  0x19   : > { %771 = vmatmul.mubr.msk.f32.gmra.mrb[4].mxu0 %vm252_vm1, %v230_v13 }
  0x1a   : > { %773 = vmatprep.mubr.msk.f32.mxu0 %vm882_vm0, %v883_v6 }
  0x1d   : > { %774 = vmatmul.mubr.msk.f32.gmra.mrb[6].mxu0 %vm252_vm1, %v231_v14 }
  0x1e   : > { %776 = vmatprep.mubr.msk.f32.mxu0 %vm882_vm0, %v883_v6 }
  0x21   : > { %777 = vmatmul.mubr.msk.f32.gmra.mrb[8].mxu0 %vm252_vm1, %v232_v15 }
  0x22   : > { %779 = vmatprep.mubr.msk.f32.mxu0 %vm882_vm0, %v883_v6 }
  0x25   : > { %780 = vmatmul.mubr.msk.f32.gmra.mrb[10].mxu0 %vm252_vm1, %v233_v16 }
  0x26   : > { %782 = vmatprep.mubr.msk.f32.mxu0 %vm882_vm0, %v883_v6 }
  0x29   : > { %783 = vmatmul.mubr.msk.f32.gmra.mrb[12].mxu0 %vm252_vm1, %v234_v17  ;;  %v706_v17 = vld [vmem:[%s1108_s4] ss:$0 sm:$0xff] }
  0x2a   : > { %785 = vmatprep.mubr.msk.f32.mxu0 %vm882_vm0, %v883_v6 }
  0x2d   : > { %786 = vmatmul.mubr.msk.f32.gmra.mrb[14].mxu0 %vm252_vm1, %v235_v18 }
  0x2e   : > { %788 = vmatprep.mubr.msk.f32.mxu0 %vm882_vm0, %v883_v6 }
  0x31   : > { %789 = vmatmul.mubr.msk.f32.gmra.mrb[16].mxu0 %vm252_vm1, %v236_v19 }
  0x32   : > { %791 = vmatprep.mubr.msk.f32.mxu0 %vm882_vm0, %v883_v6 }
  0x35   : > { %792 = vmatmul.mubr.msk.f32.gmra.mrb[18].mxu0 %vm252_vm1, %v237_v20 }
  0x36   : > { %794 = vmatprep.mubr.msk.f32.mxu0 %vm882_vm0, %v883_v6 }
  0x39   : > { %795 = vmatmul.mubr.msk.f32.gmra.mrb[20].mxu0 %vm252_vm1, %v238_v21 }
  0x3a   : > { %797 = vmatprep.mubr.msk.f32.mxu0 %vm882_vm0, %v883_v6 }
  0x3d   : > { %798 = vmatmul.mubr.msk.f32.gmra.mrb[22].mxu0 %vm252_vm1, %v239_v22 }
  0x3e   : > { %800 = vmatprep.mubr.msk.f32.mxu0 %vm882_vm0, %v883_v6 }
  0x41   : > { %801 = vmatmul.mubr.msk.f32.gmra.mrb[24].mxu0 %vm252_vm1, %v240_v23 }
  0xe4   : > { %v358_v28 = vpop.f32.mrb[0].mxu0 }
  0xe5   : > { %v359_v29 = vadd.f32 %v1013_v27, %v358_v28  ;;  %v766_v30 = vpop.f32.mrb[1].mxu0 }
  0xe7   : > { %v422_v31 = vmax.f32 %v359_v29, 0.0 }
  0xe8   : > { %v363_v32 = vpop.f32.mrb[2].mxu0 }
  0xe9   : > { %v364_v33 = vadd.f32 %v1013_v27, %v363_v32  ;;  %v769_v34 = vpop.f32.mrb[3].mxu0  ;;  %812 = vmatmul.mubr.msk.f32.vlgmr.msra.gmra.mrb[0].mxu1 %vm252_vm1, %v422_v31 }
  0xea   : > { %814 = vmatprep.mubr.msk.f32.mxu1 %vm882_vm0, %v883_v6 }
  0xeb   : > { %v423_v35 = vmax.f32 %v364_v33, 0.0 }
  0xec   : > { %v368_v36 = vpop.f32.mrb[4].mxu0 }
  0xed   : > { %v369_v37 = vadd.f32 %v1013_v27, %v368_v36  ;;  %v772_v38 = vpop.f32.mrb[5].mxu0  ;;  %815 = vmatmul.mubr.msk.f32.gmra.mrb[2].mxu1 %vm252_vm1, %v423_v35 }
  0xee   : > { %817 = vmatprep.mubr.msk.f32.mxu1 %vm882_vm0, %v883_v6 }
  0xef   : > { %v424_v39 = vmax.f32 %v369_v37, 0.0 }
  0xf0   : > { %v373_v40 = vpop.f32.mrb[6].mxu0 }
  0xf1   : > { %v374_v41 = vadd.f32 %v1013_v27, %v373_v40  ;;  %v775_v42 = vpop.f32.mrb[7].mxu0  ;;  %818 = vmatmul.mubr.msk.f32.gmra.mrb[4].mxu1 %vm252_vm1, %v424_v39 }
  0xf2   : > { %820 = vmatprep.mubr.msk.f32.mxu1 %vm882_vm0, %v883_v6 }
  0xf3   : > { %v425_v43 = vmax.f32 %v374_v41, 0.0 }
  0xf4   : > { %v378_v44 = vpop.f32.mrb[8].mxu0 }
  0xf5   : > { %v379_v45 = vadd.f32 %v1013_v27, %v378_v44  ;;  %v778_v46 = vpop.f32.mrb[9].mxu0  ;;  %821 = vmatmul.mubr.msk.f32.gmra.mrb[6].mxu1 %vm252_vm1, %v425_v43 }
  0xf6   : > { %823 = vmatprep.mubr.msk.f32.mxu1 %vm882_vm0, %v883_v6 }
  0xf7   : > { %v426_v47 = vmax.f32 %v379_v45, 0.0 }
  0xf8   : > { %v383_v48 = vpop.f32.mrb[10].mxu0 }
  0xf9   : > { %v384_v49 = vadd.f32 %v1013_v27, %v383_v48  ;;  %v781_v50 = vpop.f32.mrb[11].mxu0  ;;  %824 = vmatmul.mubr.msk.f32.gmra.mrb[8].mxu1 %vm252_vm1, %v426_v47 }
  0xfa   : > { %826 = vmatprep.mubr.msk.f32.mxu1 %vm882_vm0, %v883_v6 }
  0xfb   : > { %v427_v51 = vmax.f32 %v384_v49, 0.0 }
  0xfc   : > { %v388_v52 = vpop.f32.mrb[12].mxu0 }
  0xfd   : > { %v389_v53 = vadd.f32 %v1013_v27, %v388_v52  ;;  %v784_v54 = vpop.f32.mrb[13].mxu0  ;;  %827 = vmatmul.mubr.msk.f32.gmra.mrb[10].mxu1 %vm252_vm1, %v427_v51 }
  0xfe   : > { %829 = vmatprep.mubr.msk.f32.mxu1 %vm882_vm0, %v883_v6 }
  0xff   : > { %v428_v55 = vmax.f32 %v389_v53, 0.0 }
 0x100   : > { %v393_v56 = vpop.f32.mrb[14].mxu0 }
 0x101   : > { %v394_v57 = vadd.f32 %v1013_v27, %v393_v56  ;;  %v787_v58 = vpop.f32.mrb[15].mxu0  ;;  %830 = vmatmul.mubr.msk.f32.gmra.mrb[12].mxu1 %vm252_vm1, %v428_v55 }
 0x102   : > { %832 = vmatprep.mubr.msk.f32.mxu1 %vm882_vm0, %v883_v6 }
 0x103   : > { %v429_v59 = vmax.f32 %v394_v57, 0.0 }
 0x104   : > { %v398_v60 = vpop.f32.mrb[16].mxu0 }
 0x105   : > { %v399_v61 = vadd.f32 %v1013_v27, %v398_v60  ;;  %v790_v62 = vpop.f32.mrb[17].mxu0  ;;  %833 = vmatmul.mubr.msk.f32.gmra.mrb[14].mxu1 %vm252_vm1, %v429_v59 }
 0x106   : > { %835 = vmatprep.mubr.msk.f32.mxu1 %vm882_vm0, %v883_v6 }
 0x107   : > { %v430_v63 = vmax.f32 %v399_v61, 0.0 }
 0x108   : > { %v403_v0 = vpop.f32.mrb[18].mxu0 }
 0x109   : > { %v404_v1 = vadd.f32 %v1013_v27, %v403_v0  ;;  %v793_v2 = vpop.f32.mrb[19].mxu0  ;;  %836 = vmatmul.mubr.msk.f32.gmra.mrb[16].mxu1 %vm252_vm1, %v430_v63 }
 0x10a   : > { %838 = vmatprep.mubr.msk.f32.mxu1 %vm882_vm0, %v883_v6 }
 0x10b   : > { %v431_v3 = vmax.f32 %v404_v1, 0.0 }
 0x10c   : > { %v408_v4 = vpop.f32.mrb[20].mxu0 }
 0x10d   : > { %v409_v5 = vadd.f32 %v1013_v27, %v408_v4  ;;  %v796_v7 = vpop.f32.mrb[21].mxu0  ;;  %839 = vmatmul.mubr.msk.f32.gmra.mrb[18].mxu1 %vm252_vm1, %v431_v3 }
 0x10e   : > { %841 = vmatprep.mubr.msk.f32.mxu1 %vm882_vm0, %v883_v6 }
 0x10f   : > { %v432_v8 = vmax.f32 %v409_v5, 0.0 }
 0x110   : > { %v413_v9 = vpop.f32.mrb[22].mxu0 }
 0x111   : > { %v414_v10 = vadd.f32 %v1013_v27, %v413_v9  ;;  %v799_v11 = vpop.f32.mrb[23].mxu0  ;;  %842 = vmatmul.mubr.msk.f32.gmra.mrb[20].mxu1 %vm252_vm1, %v432_v8 }
 0x112   : > { %844 = vmatprep.mubr.msk.f32.mxu1 %vm882_vm0, %v883_v6 }
 0x113   : > { %v433_v12 = vmax.f32 %v414_v10, 0.0 }
 0x114   : > { %v418_v13 = vpop.f32.mrb[24].mxu0 }
 0x115   : > { %v419_v14 = vadd.f32 %v1013_v27, %v418_v13  ;;  %v802_v15 = vpop.f32.mrb[25].mxu0  ;;  %845 = vmatmul.mubr.msk.f32.gmra.mrb[22].mxu1 %vm252_vm1, %v433_v12 }
 0x116   : > { %847 = vmatprep.mubr.msk.f32.mxu1 %vm882_vm0, %v883_v6 }
 0x117   : > { %v434_v16 = vmax.f32 %v419_v14, 0.0 }
 0x119   : > { %848 = vmatmul.mubr.msk.f32.gmra.mrb[24].mxu1 %vm252_vm1, %v434_v16 }
 0x1bc   : > { %v551_v18 = vpop.f32.mrb[0].mxu1 }
 0x1bd   : > { %v552_v6 = vadd.f32 %v706_v17, %v551_v18  ;;  %v813_v19 = vpop.f32.mrb[1].mxu1 }
 0x1bf   : > { %616 = vst.msk [vmem:[%s1073_s23] sm:$0xff] %vm615_vm2, %v552_v6 }
 0x1c0   : > { %v556_v20 = vpop.f32.mrb[2].mxu1 }
 0x1c1   : > { %v557_v21 = vadd.f32 %v706_v17, %v556_v20  ;;  %v816_v22 = vpop.f32.mrb[3].mxu1 }
 0x1c3   : > { %617 = vst.msk [vmem:[%s1073_s23 + $0x8] sm:$0xff] %vm615_vm2, %v557_v21 }
 0x1c4   : > { %v561_v23 = vpop.f32.mrb[4].mxu1 }
 0x1c5   : > { %v562_v24 = vadd.f32 %v706_v17, %v561_v23  ;;  %v819_v25 = vpop.f32.mrb[5].mxu1 }
 0x1c7   : > { %618 = vst.msk [vmem:[%s1073_s23 + $0x10] sm:$0xff] %vm615_vm2, %v562_v24 }
 0x1c8   : > { %v566_v26 = vpop.f32.mrb[6].mxu1 }
 0x1c9   : > { %v567_v27 = vadd.f32 %v706_v17, %v566_v26  ;;  %v822_v28 = vpop.f32.mrb[7].mxu1 }
 0x1cb   : > { %619 = vst.msk [vmem:[%s1073_s23 + $0x18] sm:$0xff] %vm615_vm2, %v567_v27 }
 0x1cc   : > { %v571_v29 = vpop.f32.mrb[8].mxu1 }
 0x1cd   : > { %v572_v30 = vadd.f32 %v706_v17, %v571_v29  ;;  %v825_v31 = vpop.f32.mrb[9].mxu1 }
 0x1cf   : > { %620 = vst.msk [vmem:[%s1073_s23 + $0x20] sm:$0xff] %vm615_vm2, %v572_v30 }
 0x1d0   : > { %v576_v32 = vpop.f32.mrb[10].mxu1 }
 0x1d1   : > { %v577_v33 = vadd.f32 %v706_v17, %v576_v32  ;;  %v828_v34 = vpop.f32.mrb[11].mxu1 }
 0x1d3   : > { %621 = vst.msk [vmem:[%s1073_s23 + $0x28] sm:$0xff] %vm615_vm2, %v577_v33 }
 0x1d4   : > { %v581_v35 = vpop.f32.mrb[12].mxu1 }
 0x1d5   : > { %v582_v36 = vadd.f32 %v706_v17, %v581_v35  ;;  %v831_v37 = vpop.f32.mrb[13].mxu1 }
 0x1d7   : > { %622 = vst.msk [vmem:[%s1073_s23 + $0x30] sm:$0xff] %vm615_vm2, %v582_v36 }
 0x1d8   : > { %v586_v38 = vpop.f32.mrb[14].mxu1 }
 0x1d9   : > { %v587_v39 = vadd.f32 %v706_v17, %v586_v38  ;;  %v834_v40 = vpop.f32.mrb[15].mxu1 }
 0x1db   : > { %623 = vst.msk [vmem:[%s1073_s23 + $0x38] sm:$0xff] %vm615_vm2, %v587_v39 }
 0x1dc   : > { %v591_v41 = vpop.f32.mrb[16].mxu1 }
 0x1dd   : > { %v592_v42 = vadd.f32 %v706_v17, %v591_v41  ;;  %v837_v43 = vpop.f32.mrb[17].mxu1 }
 0x1df   : > { %624 = vst.msk [vmem:[%s1073_s23 + $0x40] sm:$0xff] %vm615_vm2, %v592_v42 }
 0x1e0   : > { %v596_v44 = vpop.f32.mrb[18].mxu1 }
 0x1e1   : > { %v597_v45 = vadd.f32 %v706_v17, %v596_v44  ;;  %v840_v46 = vpop.f32.mrb[19].mxu1 }
 0x1e3   : > { %625 = vst.msk [vmem:[%s1073_s23 + $0x48] sm:$0xff] %vm615_vm2, %v597_v45 }
 0x1e4   : > { %v601_v47 = vpop.f32.mrb[20].mxu1 }
 0x1e5   : > { %v602_v48 = vadd.f32 %v706_v17, %v601_v47  ;;  %v843_v49 = vpop.f32.mrb[21].mxu1 }
 0x1e7   : > { %626 = vst.msk [vmem:[%s1073_s23 + $0x50] sm:$0xff] %vm615_vm2, %v602_v48 }
 0x1e8   : > { %v606_v50 = vpop.f32.mrb[22].mxu1 }
 0x1e9   : > { %v607_v51 = vadd.f32 %v706_v17, %v606_v50  ;;  %v846_v52 = vpop.f32.mrb[23].mxu1 }
 0x1eb   : > { %627 = vst.msk [vmem:[%s1073_s23 + $0x58] sm:$0xff] %vm615_vm2, %v607_v51 }
 0x1ec   : > { %v611_v53 = vpop.f32.mrb[24].mxu1 }
 0x1ed   : > { %v612_v54 = vadd.f32 %v706_v17, %v611_v53  ;;  %v849_v55 = vpop.f32.mrb[25].mxu1 }
 0x1ef   : > { %628 = vst.msk [vmem:[%s1073_s23 + $0x60] sm:$0xff] %vm615_vm2, %v612_v54 }
 0x1f0 PF: > { %s15_s18 = sadd.s32 1, %s879_s18  }
 0x1f1   : > { %p12_p4 = scmp.ge.s32.totalorder %s15_s18, 4  }
 0x1f3   :  { %14 = sbr.rel (!%p12_p4) target bundleno = 1 (0x1), region = 70 }

</bundles_post_ra>
